<compile_context>
chip_gen: v7x
topology: tpu7x:2x2x1
jax: 0.10.0
libtpu: 0.0.40
codegen_flags: <defaults>
</compile_context>

<pallas_src>
import jax
import jax.numpy as jnp
from jax.experimental import pallas as pl
from jax.experimental.pallas import tpu as pltpu


def _round_up(x, m):
    return ((x + m - 1) // m) * m


def dueling_dqn_kernel(
    x_ref,            # (TB, input_dim)  f32
    w1_ref, b1_ref,   # (input_dim, 128) bf16 / (1, 128) f32
    w2_ref, b2_ref,   # (128, 128)       bf16 / (1, 128) f32
    wh1_ref, bh1_ref,  # fused value|adv hidden: (128, 128) bf16 / (1, 128) f32
    wq_ref, bq_ref,    # fused dueling head:     (128, OUT_PAD) bf16 / (1, OUT_PAD) f32
    q_ref,             # (TB, OUT_PAD)   bf16
):
    x = x_ref[...].astype(jnp.bfloat16)

    # Common trunk: fc1 -> relu -> (dropout=id) -> fc2 -> relu -> (dropout=id)
    h1 = jnp.dot(x, w1_ref[...], preferred_element_type=jnp.float32) + b1_ref[...]
    h1 = jnp.maximum(h1, 0.0).astype(jnp.bfloat16)
    h2 = jnp.dot(h1, w2_ref[...], preferred_element_type=jnp.float32) + b2_ref[...]
    h2 = jnp.maximum(h2, 0.0).astype(jnp.bfloat16)

    # Fused value/advantage hidden layer (single matmul for both streams).
    hh = jnp.dot(h2, wh1_ref[...], preferred_element_type=jnp.float32) + bh1_ref[...]
    hh = jnp.maximum(hh, 0.0).astype(jnp.bfloat16)

    # Fused dueling head: the combine q = V + A_i - mean_j(A_j) is already
    # folded into wq/bq host-side, so the slab *is* the Q-values
    # (lanes 0..A-1 real, remaining lanes exactly 0).
    q = jnp.dot(hh, wq_ref[...], preferred_element_type=jnp.float32) + bq_ref[...]
    q_ref[...] = q.astype(q_ref.dtype)


def prepare_params(params):
    """One-time host-side fusion of the raw Linear params into kernel layout."""
    H1 = params["w1"].shape[1]                      # 128
    Hv = params["wv1"].shape[1]                     # 64
    Ha = params["wa1"].shape[1]                     # 64
    HH = Hv + Ha                                    # 128
    A = params["wa2"].shape[1]
    OUT_PAD = _round_up(A, 128)

    w1 = params["w1"].astype(jnp.bfloat16)          # (input_dim, 128), no K padding
    b1 = params["b1"].astype(jnp.float32)
    w2 = params["w2"].astype(jnp.bfloat16)
    b2 = params["b2"].astype(jnp.float32)

    # Fused hidden layer of both streams: [value_hidden | adv_hidden]
    wh1 = jnp.concatenate([params["wv1"], params["wa1"]], axis=1).astype(jnp.bfloat16)
    bh1 = jnp.concatenate([params["bv1"], params["ba1"]], axis=1).astype(jnp.float32)

    # Fused dueling head with the combine folded in:
    #   q_i = vh @ wv2 + ah @ (wa2[:,i] - mean_j wa2[:,j]) + bv2 + ba2[i] - mean(ba2)
    wa2_centered = params["wa2"] - jnp.mean(params["wa2"], axis=1, keepdims=True)
    wq = jnp.zeros((HH, OUT_PAD), jnp.float32)
    wq = wq.at[:Hv, :A].set(jnp.broadcast_to(params["wv2"], (Hv, A)))
    wq = wq.at[Hv:, :A].set(wa2_centered)
    wq = wq.astype(jnp.bfloat16)

    bq = jnp.zeros((1, OUT_PAD), jnp.float32)
    bq = bq.at[:, :A].set(
        params["bv2"] + params["ba2"] - jnp.mean(params["ba2"], axis=1, keepdims=True)
    )

    return dict(
        w1=w1, b1=b1, w2=w2, b2=b2, wh1=wh1, bh1=bh1, wq=wq, bq=bq,
        num_actions=A, hidden=H1, fused_hidden=HH, out_pad=OUT_PAD,
    )


def dueling_dqn_forward(x, fused, *, block_batch=1024):
    """x: (B, input_dim) float32. fused: output of prepare_params()."""
    B, input_dim = x.shape
    H1 = fused["hidden"]
    HH = fused["fused_hidden"]
    OUT_PAD = fused["out_pad"]
    A = fused["num_actions"]

    # Batch tile: big enough to amortize per-grid-step overhead, but keep at
    # least 2 grid steps for large batches so v7x's 2 TCs both get work.
    if B <= 8:
        TB = B                                        # block dim == full array dim: legal
        B_pad = B
    else:
        TB = min(block_batch, _round_up(pl.cdiv(B, 2), 8))
        B_pad = _round_up(B, TB)
    x_in = x if B_pad == B else jnp.pad(x, ((0, B_pad - B), (0, 0)))
    grid = (B_pad // TB,)

    def weight_spec(shape):
        # Constant index_map -> fetched once, stays VMEM-resident across grid steps.
        return pl.BlockSpec(shape, lambda i: (0, 0))

    out = pl.pallas_call(
        dueling_dqn_kernel,
        out_shape=jax.ShapeDtypeStruct((B_pad, OUT_PAD), jnp.bfloat16),
        grid=grid,
        in_specs=[
            pl.BlockSpec((TB, input_dim), lambda i: (i, 0)),   # x: tiled over batch
            weight_spec((input_dim, H1)), weight_spec((1, H1)),
            weight_spec((H1, H1)), weight_spec((1, H1)),
            weight_spec((H1, HH)), weight_spec((1, HH)),
            weight_spec((HH, OUT_PAD)), weight_spec((1, OUT_PAD)),
        ],
        out_specs=pl.BlockSpec((TB, OUT_PAD), lambda i: (i, 0)),
        compiler_params=pltpu.CompilerParams(
            dimension_semantics=("parallel",),                 # shard batch over TCs
        ),
    )(
        x_in,
        fused["w1"], fused["b1"], fused["w2"], fused["b2"],
        fused["wh1"], fused["bh1"], fused["wq"], fused["bq"],
    )

    # Strip batch padding and padded lanes; q lives in lanes 0..A-1.
    return out[:B, :A]


def init_params(key, input_dim, output_dim):
    """Deterministic init mimicking nn.Linear's U(-1/sqrt(fan_in), 1/sqrt(fan_in))."""
    def linear(key, fan_in, fan_out):
        kw, kb = jax.random.split(key)
        bound = 1.0 / jnp.sqrt(fan_in)
        w = jax.random.uniform(kw, (fan_in, fan_out), jnp.float32, -bound, bound)
        b = jax.random.uniform(kb, (1, fan_out), jnp.float32, -bound, bound)
        return w, b

    keys = jax.random.split(key, 6)
    w1, b1 = linear(keys[0], input_dim, 128)
    w2, b2 = linear(keys[1], 128, 128)
    wv1, bv1 = linear(keys[2], 128, 64)
    wv2, bv2 = linear(keys[3], 64, 1)
    wa1, ba1 = linear(keys[4], 128, 64)
    wa2, ba2 = linear(keys[5], 64, output_dim)
    return dict(w1=w1, b1=b1, w2=w2, b2=b2,
                wv1=wv1, bv1=bv1, wv2=wv2, bv2=bv2,
                wa1=wa1, ba1=ba1, wa2=wa2, ba2=ba2)


def dueling_dqn_ref(x, p):
    """Pure-JAX f32 reference for correctness."""
    h1 = jnp.maximum(x @ p["w1"] + p["b1"], 0.0)
    h2 = jnp.maximum(h1 @ p["w2"] + p["b2"], 0.0)
    vh = jnp.maximum(h2 @ p["wv1"] + p["bv1"], 0.0)
    value = vh @ p["wv2"] + p["bv2"]
    ah = jnp.maximum(h2 @ p["wa1"] + p["ba1"], 0.0)
    adv = ah @ p["wa2"] + p["ba2"]
    return value + adv - jnp.mean(adv, axis=1, keepdims=True)


if __name__ == "__main__":
    key = jax.random.PRNGKey(0)
    k_x, k_p = jax.random.split(key)

    batch = 2
    input_dim = 32   # state size
    output_dim = 8   # action size

    x = jax.random.normal(k_x, (batch, input_dim), dtype=jnp.float32)
    params = init_params(k_p, input_dim, output_dim)
    fused = prepare_params(params)          # one-time weight fusion / layout prep

    q = dueling_dqn_forward(x, fused)
    q = jax.block_until_ready(q)

    q_ref = dueling_dqn_ref(x, params)
    assert q.shape == (batch, output_dim)
    q_f32 = q.astype(jnp.float32)
    max_err = float(jnp.max(jnp.abs(q_f32 - q_ref)))
    # bf16 matmuls (f32 accumulation) + bf16 output store -> loosened tolerance.
    assert jnp.allclose(q_f32, q_ref, atol=5e-2, rtol=5e-2), (
        f"mismatch vs reference (max abs err {max_err:.3e})"
    )

    print("KERNEL_OK")
</pallas_src>

<mosaic_0001>
module attributes {stable_mosaic.version = 11 : i64} {
  func.func @dueling_dqn_kernel(%arg0: i32, %arg1: memref<2x32xf32, #tpu.memory_space<vmem>>, %arg2: memref<32x128xbf16, #tpu.memory_space<vmem>>, %arg3: memref<1x128xf32, #tpu.memory_space<vmem>>, %arg4: memref<128x128xbf16, #tpu.memory_space<vmem>>, %arg5: memref<1x128xf32, #tpu.memory_space<vmem>>, %arg6: memref<128x128xbf16, #tpu.memory_space<vmem>>, %arg7: memref<1x128xf32, #tpu.memory_space<vmem>>, %arg8: memref<128x128xbf16, #tpu.memory_space<vmem>>, %arg9: memref<1x128xf32, #tpu.memory_space<vmem>>, %arg10: memref<2x128xbf16, #tpu.memory_space<vmem>>) attributes {dimension_semantics = [#tpu.dimension_semantics<parallel>], iteration_bounds = array<i64: 1>, scalar_prefetch = 0 : i64, scratch_operands = 0 : i64, tpu.core_type = #tpu.core_type<tc>, window_params = [{transform_indices = @transform_0, window_bounds = array<i64: 2, 32>}, {pipeline_mode = #tpu.pipeline_mode<synchronous>, transform_indices = @transform_1, window_bounds = array<i64: 32, 128>}, {pipeline_mode = #tpu.pipeline_mode<synchronous>, transform_indices = @transform_2, window_bounds = array<i64: 1, 128>}, {pipeline_mode = #tpu.pipeline_mode<synchronous>, transform_indices = @transform_3, window_bounds = array<i64: 128, 128>}, {pipeline_mode = #tpu.pipeline_mode<synchronous>, transform_indices = @transform_4, window_bounds = array<i64: 1, 128>}, {pipeline_mode = #tpu.pipeline_mode<synchronous>, transform_indices = @transform_5, window_bounds = array<i64: 128, 128>}, {pipeline_mode = #tpu.pipeline_mode<synchronous>, transform_indices = @transform_6, window_bounds = array<i64: 1, 128>}, {pipeline_mode = #tpu.pipeline_mode<synchronous>, transform_indices = @transform_7, window_bounds = array<i64: 128, 128>}, {pipeline_mode = #tpu.pipeline_mode<synchronous>, transform_indices = @transform_8, window_bounds = array<i64: 1, 128>}, {transform_indices = @transform_9, window_bounds = array<i64: 2, 128>}]} {
    %c0 = arith.constant 0 : index
    %c0_0 = arith.constant 0 : index
    %0 = vector.load %arg1[%c0, %c0_0] : memref<2x32xf32, #tpu.memory_space<vmem>>, vector<2x32xf32>
    %1 = arith.truncf %0 : vector<2x32xf32> to vector<2x32xbf16>
    %c0_1 = arith.constant 0 : index
    %c0_2 = arith.constant 0 : index
    %2 = vector.load %arg2[%c0_1, %c0_2] : memref<32x128xbf16, #tpu.memory_space<vmem>>, vector<32x128xbf16>
    %cst = arith.constant dense<0.000000e+00> : vector<2x128xf32>
    %3 = tpu.matmul %1, %2, %cst {dimension_numbers = #tpu.dot_dimension_numbers<[1], [0], [0], [1], [0, 0, 1, 1], [], []>} : vector<2x32xbf16>, vector<32x128xbf16>, vector<2x128xf32> -> vector<2x128xf32>
    %c0_3 = arith.constant 0 : index
    %c0_4 = arith.constant 0 : index
    %4 = vector.load %arg3[%c0_3, %c0_4] : memref<1x128xf32, #tpu.memory_space<vmem>>, vector<1x128xf32>
    %5 = vector.broadcast %4 : vector<1x128xf32> to vector<2x128xf32>
    %6 = arith.addf %3, %5 : vector<2x128xf32>
    %cst_5 = arith.constant 0.000000e+00 : f32
    %7 = vector.broadcast %cst_5 : f32 to vector<2x128xf32>
    %8 = arith.maximumf %6, %7 : vector<2x128xf32>
    %9 = arith.truncf %8 : vector<2x128xf32> to vector<2x128xbf16>
    %c0_6 = arith.constant 0 : index
    %c0_7 = arith.constant 0 : index
    %10 = vector.load %arg4[%c0_6, %c0_7] : memref<128x128xbf16, #tpu.memory_space<vmem>>, vector<128x128xbf16>
    %cst_8 = arith.constant dense<0.000000e+00> : vector<2x128xf32>
    %11 = tpu.matmul %9, %10, %cst_8 {dimension_numbers = #tpu.dot_dimension_numbers<[1], [0], [0], [1], [0, 0, 1, 1], [], []>} : vector<2x128xbf16>, vector<128x128xbf16>, vector<2x128xf32> -> vector<2x128xf32>
    %c0_9 = arith.constant 0 : index
    %c0_10 = arith.constant 0 : index
    %12 = vector.load %arg5[%c0_9, %c0_10] : memref<1x128xf32, #tpu.memory_space<vmem>>, vector<1x128xf32>
    %13 = vector.broadcast %12 : vector<1x128xf32> to vector<2x128xf32>
    %14 = arith.addf %11, %13 : vector<2x128xf32>
    %cst_11 = arith.constant 0.000000e+00 : f32
    %15 = vector.broadcast %cst_11 : f32 to vector<2x128xf32>
    %16 = arith.maximumf %14, %15 : vector<2x128xf32>
    %17 = arith.truncf %16 : vector<2x128xf32> to vector<2x128xbf16>
    %c0_12 = arith.constant 0 : index
    %c0_13 = arith.constant 0 : index
    %18 = vector.load %arg6[%c0_12, %c0_13] : memref<128x128xbf16, #tpu.memory_space<vmem>>, vector<128x128xbf16>
    %cst_14 = arith.constant dense<0.000000e+00> : vector<2x128xf32>
    %19 = tpu.matmul %17, %18, %cst_14 {dimension_numbers = #tpu.dot_dimension_numbers<[1], [0], [0], [1], [0, 0, 1, 1], [], []>} : vector<2x128xbf16>, vector<128x128xbf16>, vector<2x128xf32> -> vector<2x128xf32>
    %c0_15 = arith.constant 0 : index
    %c0_16 = arith.constant 0 : index
    %20 = vector.load %arg7[%c0_15, %c0_16] : memref<1x128xf32, #tpu.memory_space<vmem>>, vector<1x128xf32>
    %21 = vector.broadcast %20 : vector<1x128xf32> to vector<2x128xf32>
    %22 = arith.addf %19, %21 : vector<2x128xf32>
    %cst_17 = arith.constant 0.000000e+00 : f32
    %23 = vector.broadcast %cst_17 : f32 to vector<2x128xf32>
    %24 = arith.maximumf %22, %23 : vector<2x128xf32>
    %25 = arith.truncf %24 : vector<2x128xf32> to vector<2x128xbf16>
    %c0_18 = arith.constant 0 : index
    %c0_19 = arith.constant 0 : index
    %26 = vector.load %arg8[%c0_18, %c0_19] : memref<128x128xbf16, #tpu.memory_space<vmem>>, vector<128x128xbf16>
    %cst_20 = arith.constant dense<0.000000e+00> : vector<2x128xf32>
    %27 = tpu.matmul %25, %26, %cst_20 {dimension_numbers = #tpu.dot_dimension_numbers<[1], [0], [0], [1], [0, 0, 1, 1], [], []>} : vector<2x128xbf16>, vector<128x128xbf16>, vector<2x128xf32> -> vector<2x128xf32>
    %c0_21 = arith.constant 0 : index
    %c0_22 = arith.constant 0 : index
    %28 = vector.load %arg9[%c0_21, %c0_22] : memref<1x128xf32, #tpu.memory_space<vmem>>, vector<1x128xf32>
    %29 = vector.broadcast %28 : vector<1x128xf32> to vector<2x128xf32>
    %30 = arith.addf %27, %29 : vector<2x128xf32>
    %31 = arith.truncf %30 : vector<2x128xf32> to vector<2x128xbf16>
    %c0_23 = arith.constant 0 : index
    %c0_24 = arith.constant 0 : index
    %32 = vector.load %arg10[%c0_23, %c0_24] : memref<2x128xbf16, #tpu.memory_space<vmem>>, vector<2x128xbf16>
    tpu.vector_store %arg10[%c0_23, %c0_24], %31 {strides = array<i32>} : memref<2x128xbf16, #tpu.memory_space<vmem>>, vector<2x128xbf16>,
    return
  }
  func.func @transform_0(%arg0: i32) -> (i32, i32) {
    %c0_i32 = arith.constant 0 : i32
    %c0_i32_0 = arith.constant 0 : i32
    return %arg0, %c0_i32 : i32, i32
  }
  func.func @transform_1(%arg0: i32) -> (i32, i32) {
    %c0_i32 = arith.constant 0 : i32
    %c0_i32_0 = arith.constant 0 : i32
    %c0_i32_1 = arith.constant 0 : i32
    return %c0_i32, %c0_i32_0 : i32, i32
  }
  func.func @transform_2(%arg0: i32) -> (i32, i32) {
    %c0_i32 = arith.constant 0 : i32
    %c0_i32_0 = arith.constant 0 : i32
    %c0_i32_1 = arith.constant 0 : i32
    return %c0_i32, %c0_i32_0 : i32, i32
  }
  func.func @transform_3(%arg0: i32) -> (i32, i32) {
    %c0_i32 = arith.constant 0 : i32
    %c0_i32_0 = arith.constant 0 : i32
    %c0_i32_1 = arith.constant 0 : i32
    return %c0_i32, %c0_i32_0 : i32, i32
  }
  func.func @transform_4(%arg0: i32) -> (i32, i32) {
    %c0_i32 = arith.constant 0 : i32
    %c0_i32_0 = arith.constant 0 : i32
    %c0_i32_1 = arith.constant 0 : i32
    return %c0_i32, %c0_i32_0 : i32, i32
  }
  func.func @transform_5(%arg0: i32) -> (i32, i32) {
    %c0_i32 = arith.constant 0 : i32
    %c0_i32_0 = arith.constant 0 : i32
    %c0_i32_1 = arith.constant 0 : i32
    return %c0_i32, %c0_i32_0 : i32, i32
  }
  func.func @transform_6(%arg0: i32) -> (i32, i32) {
    %c0_i32 = arith.constant 0 : i32
    %c0_i32_0 = arith.constant 0 : i32
    %c0_i32_1 = arith.constant 0 : i32
    return %c0_i32, %c0_i32_0 : i32, i32
  }
  func.func @transform_7(%arg0: i32) -> (i32, i32) {
    %c0_i32 = arith.constant 0 : i32
    %c0_i32_0 = arith.constant 0 : i32
    %c0_i32_1 = arith.constant 0 : i32
    return %c0_i32, %c0_i32_0 : i32, i32
  }
  func.func @transform_8(%arg0: i32) -> (i32, i32) {
    %c0_i32 = arith.constant 0 : i32
    %c0_i32_0 = arith.constant 0 : i32
    %c0_i32_1 = arith.constant 0 : i32
    return %c0_i32, %c0_i32_0 : i32, i32
  }
  func.func @transform_9(%arg0: i32) -> (i32, i32) {
    %c0_i32 = arith.constant 0 : i32
    %c0_i32_0 = arith.constant 0 : i32
    return %arg0, %c0_i32 : i32, i32
  }
}

</mosaic_0001>

<bundles_post_ra>
// kernel: tpu_custom_call.1
= control target key start
LH: loop header
LB: loop body
LE: loop exit
PB: predicated region body
PF: predicated region fallthrough
CT: control target
= control target key end

     0   :  { %14 = vsyncpa [#allocation3], 0  ;;  %s1022_s0 = inlined_call_operand.hbm [shape: f32[2,32], index: 0, kind: input, shape index: {}]   ;;  %s1023_s1 = inlined_call_operand.hbm [shape: bf16[32,128], index: 1, kind: input, shape index: {}]   ;;  %s1024_s2 = inlined_call_operand.vmem [shape: f32[1,128], index: 2, kind: input, shape index: {}]   ;;  %s1025_s3 = inlined_call_operand.hbm [shape: bf16[128,128], index: 3, kind: input, shape index: {}]   ;;  %s1026_s4 = inlined_call_operand.vmem [shape: f32[1,128], index: 4, kind: input, shape index: {}]   ;;  %s1027_s5 = inlined_call_operand.hbm [shape: bf16[128,128], index: 5, kind: input, shape index: {}]   ;;  %s1028_s6 = inlined_call_operand.vmem [shape: f32[1,128], index: 6, kind: input, shape index: {}]   ;;  %s1029_s7 = inlined_call_operand.hbm [shape: bf16[128,128], index: 7, kind: input, shape index: {}]   ;;  %s1030_s8 = inlined_call_operand.vmem [shape: f32[1,128], index: 8, kind: input, shape index: {}]   ;;  %s1031_s9 = inlined_call_operand.hbm [shape: bf16[2,128], index: 9, kind: output, shape index: {}]  }
   0x1   :  { %15 = vsyncpa [#allocation6], 0 }
   0x2   :  { %16 = vsyncpa [#allocation9], 0 }
   0x3   :  { %17 = vsyncpa [#allocation4], 0  ;;  %s832_s30 = smov [#allocation5]   ;;  %s692_s13 = scalar_lea.hbm %s1023_s1, 256 }
   0x4   :  { %s33_s10 = sshll.u32 %s832_s30, 4  ;;  %p693_p0 = scmp.ne.s32.totalorder %s1023_s1, %s692_s13  ;;  %s34_s10 = int_to_ptr.vmem [resolvable:$true] %s33_s10 }
   0x5   :  { %p696_p1 = scmp.lt.u32.totalorder %s692_s13, %s1023_s1 }
   0x7   :  { %p698_p2 = pnand %p696_p1, %p693_p0 }
   0x9   :  { %701 = shalt.err (!%p698_p2)
}
   0xa   :  { %s702_s18 = scalar_lea.vmem %s34_s10, 256  ;;  %p707_p4 = scmp.lt.s32.totalorder %s34_s10, %s34_s10 }
   0xb   :  { %p703_p3 = scmp.ne.s32.totalorder %s34_s10, %s702_s18  ;;  %p708_p5 = scmp.lt.s32.totalorder %s702_s18, %s702_s18 }
   0xd   :  { %p709_p6 = por %p708_p5, %p707_p4 }
   0xf   :  { %p710_p7 = pnand %p709_p6, %p703_p3 }
  0x11   :  { %713 = shalt.err (!%p710_p7)
}
  0x12   :  { %s833_s19 = smov 64   ;;  %s834_s20 = smov 4  }
  0x13   :  { %39 = dma.hbm_to_vmem [thread:$0]  %s1023_s1, 256, %s34_s10, [#allocation6], %s833_s19, %s833_s19, %s834_s20  }
  0x14   :  { %s835_s23 = smov [#allocation8]   ;;  %s836_s25 = smov [#allocation2]  }
  0x15   :  { %s61_s24 = sshll.u32 %s835_s23, 4  ;;  %s24_s26 = sshll.u32 %s836_s25, 4  ;;  %s62_s24 = int_to_ptr.vmem [resolvable:$true] %s61_s24  ;;  %s25_s26 = int_to_ptr.vmem [resolvable:$true] %s24_s26 }
  0x16   :  { %s714_s29 = scalar_lea.hbm %s1027_s5, 1024 }
  0x17   :  { %p715_p8 = scmp.ne.s32.totalorder %s1027_s5, %s714_s29  ;;  %p718_p9 = scmp.lt.u32.totalorder %s714_s29, %s1027_s5 }
  0x19   :  { %p720_p10 = pnand %p718_p9, %p715_p8 }
  0x1b   :  { %723 = shalt.err (!%p720_p10)
}
  0x1c   :  { %s724_s1 = scalar_lea.vmem %s62_s24, 1024  ;;  %p729_p12 = scmp.lt.s32.totalorder %s62_s24, %s62_s24 }
  0x1d   :  { %p725_p11 = scmp.ne.s32.totalorder %s62_s24, %s724_s1  ;;  %p730_p13 = scmp.lt.s32.totalorder %s724_s1, %s724_s1 }
  0x1f   :  { %p731_p0 = por %p730_p13, %p729_p12 }
  0x21   :  { %p732_p1 = pnand %p731_p0, %p725_p11 }
  0x23   :  { %735 = shalt.err (!%p732_p1)
}
  0x24   :  { %67 = dma.hbm_to_vmem [thread:$0]  %s1027_s5, 1024, %s62_s24, [#allocation9], %s833_s19, %s833_s19, %s834_s20  }
  0x25   :  { %s736_s17 = scalar_lea.hbm %s1022_s0, 32 }
  0x26   :  { %p737_p2 = scmp.ne.s32.totalorder %s1022_s0, %s736_s17  ;;  %p740_p3 = scmp.lt.u32.totalorder %s736_s17, %s1022_s0 }
  0x28   :  { %p742_p4 = pnand %p740_p3, %p737_p2 }
  0x2a   :  { %745 = shalt.err (!%p742_p4)
}
  0x2b   :  { %s746_s25 = scalar_lea.vmem %s25_s26, 32  ;;  %p751_p6 = scmp.lt.s32.totalorder %s25_s26, %s25_s26 }
  0x2c   :  { %p747_p5 = scmp.ne.s32.totalorder %s25_s26, %s746_s25  ;;  %p752_p7 = scmp.lt.s32.totalorder %s746_s25, %s746_s25 }
  0x2e   :  { %p753_p8 = por %p752_p7, %p751_p6 }
  0x30   :  { %p754_p9 = pnand %p753_p8, %p747_p5 }
  0x32   :  { %757 = shalt.err (!%p754_p9)
}
  0x33   :  { %27 = dma.hbm_to_vmem [thread:$0]  %s1022_s0, 32, %s25_s26, [#allocation3]  }
  0x34   :  { %s837_s27 = smov [#allocation7]   ;;  %s838_s29 = smov [#allocation10]  }
  0x35   :  { %s47_s28 = sshll.u32 %s837_s27, 4  ;;  %s75_s30 = sshll.u32 %s838_s29, 4  ;;  %s48_s28 = int_to_ptr.vmem [resolvable:$true] %s47_s28  ;;  %s76_s30 = int_to_ptr.vmem [resolvable:$true] %s75_s30 }
  0x36   :  { %s758_s13 = scalar_lea.hbm %s1025_s3, 1024 }
  0x37   :  { %p759_p10 = scmp.ne.s32.totalorder %s1025_s3, %s758_s13  ;;  %p762_p11 = scmp.lt.u32.totalorder %s758_s13, %s1025_s3 }
  0x39   :  { %p764_p12 = pnand %p762_p11, %p759_p10 }
  0x3b   :  { %767 = shalt.err (!%p764_p12)
}
  0x3c   :  { %s768_s0 = scalar_lea.vmem %s48_s28, 1024  ;;  %p773_p0 = scmp.lt.s32.totalorder %s48_s28, %s48_s28 }
  0x3d   :  { %p769_p13 = scmp.ne.s32.totalorder %s48_s28, %s768_s0  ;;  %p774_p1 = scmp.lt.s32.totalorder %s768_s0, %s768_s0 }
  0x3f   :  { %p775_p2 = por %p774_p1, %p773_p0 }
  0x41   :  { %p776_p3 = pnand %p775_p2, %p769_p13 }
  0x43   :  { %779 = shalt.err (!%p776_p3)
}
  0x44   :  { %53 = dma.hbm_to_vmem [thread:$0]  %s1025_s3, 1024, %s48_s28, [#allocation6], %s833_s19, %s833_s19, %s834_s20  }
  0x45   :  { %s780_s21 = scalar_lea.hbm %s1029_s7, 1024 }
  0x46   :  { %p781_p4 = scmp.ne.s32.totalorder %s1029_s7, %s780_s21  ;;  %p784_p5 = scmp.lt.u32.totalorder %s780_s21, %s1029_s7 }
  0x48   :  { %p786_p6 = pnand %p784_p5, %p781_p4 }
  0x4a   :  { %789 = shalt.err (!%p786_p6)
}
  0x4b   :  { %s790_s24 = scalar_lea.vmem %s76_s30, 1024  ;;  %p795_p8 = scmp.lt.s32.totalorder %s76_s30, %s76_s30 }
  0x4c   :  { %p791_p7 = scmp.ne.s32.totalorder %s76_s30, %s790_s24  ;;  %p796_p9 = scmp.lt.s32.totalorder %s790_s24, %s790_s24 }
  0x4e   :  { %p797_p10 = por %p796_p9, %p795_p8 }
  0x50   :  { %p798_p11 = pnand %p797_p10, %p791_p7 }
  0x52   :  { %801 = shalt.err (!%p798_p11)
}
  0x53   :  { %81 = dma.hbm_to_vmem [thread:$0]  %s1029_s7, 1024, %s76_s30, [#allocation9], %s833_s19, %s833_s19, %s834_s20  }
  0x54   :  { %824 = dma.done.wait [#allocation3], 32  }
  0x55   :  { %825 = vsyncadd [#allocation3], 4294967264 }
  0x56   :  { %826 = dma.done.wait [#allocation6], 1280  }
  0x57   :  { %827 = vsyncadd [#allocation6], 4294966016 }
  0x58   :  { %828 = dma.done.wait [#allocation9], 2048  }
  0x59   :  { %829 = vsyncadd [#allocation9], 4294965248  ;;  %v839_v0 = vmov 0.0   ;;  %vm840_vm0 = vmmov 0   ;;  %v666_v1 = vld [vmem:[#allocation5] sm:$0xff]   ;;  %v667_v2 = vld [vmem:[#allocation5 + $0x8] sm:$0xff]  }
  0x5a   :  { %588 = vmatprep.subr.bf16.mxu0 %v839_v0  ;;  %592 = vmatprep.mubr.msk.bf16.mxu0 %vm840_vm0, %v839_v0  ;;  %v100_v3 = vld [vmem:[#allocation2] sm:$0x3]  ;;  %v668_v4 = vld [vmem:[#allocation7] sm:$0xff]   ;;  %vm125_vm1 = vcmask 261120   ;;  %v670_v7 = vld [vmem:[#allocation7 + $0x10] sm:$0xff]   ;;  %s841_s11 = smov [#allocation11]  }
  0x5b   :  { %596 = vmatprep.subr.bf16.mxu1 %v839_v0  ;;  %612 = vmatprep.mubr.msk.bf16.mxu1 %vm840_vm0, %v839_v0  ;;  %v101_v5 = vpack.c.bf16 %v100_v3, %v100_v3  ;;  %v669_v6 = vld [vmem:[#allocation7 + $0x8] sm:$0xff]   ;;  %v671_v8 = vld [vmem:[#allocation7 + $0x18] sm:$0xff]   ;;  %v672_v9 = vld [vmem:[#allocation7 + $0x20] sm:$0xff]   ;;  %s516_s12 = sshll.u32 %s841_s11, 4  ;;  %s517_s12 = int_to_ptr.vmem [resolvable:$true] %s516_s12 }
  0x5c   :  { %589 = vmatpush3.bf16.msra.mxu0 %v666_v1  ;;  %597 = vmatpush3.bf16.msra.mxu1 %v668_v4  ;;  %v673_v10 = vld [vmem:[#allocation7 + $0x28] sm:$0xff]   ;;  %v674_v11 = vld [vmem:[#allocation7 + $0x30] sm:$0xff]   ;;  %v675_v12 = vld [vmem:[#allocation7 + $0x38] sm:$0xff]   ;;  %s806_s13 = scalar_lea.vmem %s517_s12, 32  ;;  %p807_p13 = scmp.lt.s32.totalorder %s517_s12, %s517_s12 }
  0x5d   :  { %590 = vmatprep.subr.bf16.mxu0 %v839_v0  ;;  %598 = vmatprep.subr.bf16.mxu1 %v839_v0  ;;  %v676_v13 = vld [vmem:[#allocation8] sm:$0xff]   ;;  %v677_v14 = vld [vmem:[#allocation8 + $0x8] sm:$0xff]   ;;  %v678_v15 = vld [vmem:[#allocation8 + $0x10] sm:$0xff]  }
  0x5e   :  { %v679_v16 = vld [vmem:[#allocation8 + $0x18] sm:$0xff]   ;;  %v680_v17 = vld [vmem:[#allocation8 + $0x20] sm:$0xff]   ;;  %v681_v18 = vld [vmem:[#allocation8 + $0x28] sm:$0xff]  }
  0x5f   :  { %v527_v19 = vld [vmem:[%s1024_s2] ss:$0 sm:$0xff]  ;;  %v682_v27 = vld [vmem:[#allocation8 + $0x30] sm:$0xff]   ;;  %v683_v28 = vld [vmem:[#allocation8 + $0x38] sm:$0xff]  }
  0x60   :  { %591 = vmatpush3.bf16.msra.mxu0 %v667_v2  ;;  %599 = vmatpush3.bf16.msra.mxu1 %v669_v6  ;;  %v684_v29 = vld [vmem:[#allocation10] sm:$0xff]   ;;  %v685_v30 = vld [vmem:[#allocation10 + $0x8] sm:$0xff]   ;;  %v686_v31 = vld [vmem:[#allocation10 + $0x10] sm:$0xff]  }
  0x61   :  { %616 = vmatprep.subr.bf16.mxu0 %v839_v0  ;;  %600 = vmatprep.subr.bf16.mxu1 %v839_v0  ;;  %v687_v32 = vld [vmem:[#allocation10 + $0x18] sm:$0xff]   ;;  %v688_v33 = vld [vmem:[#allocation10 + $0x20] sm:$0xff]   ;;  %v689_v34 = vld [vmem:[#allocation10 + $0x28] sm:$0xff]  }
  0x62   :  { %v531_v35 = vld [vmem:[%s1026_s4] ss:$0 sm:$0xff]  ;;  %v690_v43 = vld [vmem:[#allocation10 + $0x30] sm:$0xff]   ;;  %v691_v44 = vld [vmem:[#allocation10 + $0x38] sm:$0xff]  }
  0x63   :  { %593 = vmatmul.mubr.msk.bf16.vlgmr.msra.gmra.mrb[0].mxu0 %vm125_vm1, %v101_v5  ;;  %v540_v45 = vld [vmem:[%s1028_s6] ss:$0 sm:$0xff]  ;;  %s802_s6 = scalar_lea.vmem %s517_s12, 16 }
  0x64   :  { %632 = vmatprep.mubr.msk.bf16.mxu0 %vm840_vm0, %v839_v0  ;;  %601 = vmatpush3.bf16.msra.mxu1 %v670_v7  ;;  %v549_v53 = vld [vmem:[%s1030_s8] ss:$0 sm:$0xff]  ;;  %p803_p12 = scmp.ne.s32.totalorder %s517_s12, %s802_s6  ;;  %p808_p0 = scmp.lt.s32.totalorder %s806_s13, %s802_s6 }
  0x65   :  { %602 = vmatprep.subr.bf16.mxu1 %v839_v0  ;;  %617 = vmatpush3.bf16.msra.mxu0 %v676_v13 }
  0x66   :  { %618 = vmatprep.subr.bf16.mxu0 %v839_v0  ;;  %p809_p1 = por %p808_p0, %p807_p13 }
  0x68   :  { %603 = vmatpush3.bf16.msra.mxu1 %v671_v8  ;;  %p810_p2 = pnand %p809_p1, %p803_p12 }
  0x69   :  { %604 = vmatprep.subr.bf16.mxu1 %v839_v0  ;;  %619 = vmatpush3.bf16.msra.mxu0 %v677_v14 }
  0x6a   :  { %620 = vmatprep.subr.bf16.mxu0 %v839_v0 }
  0x6c   :  { %605 = vmatpush3.bf16.msra.mxu1 %v672_v9 }
  0x6d   :  { %606 = vmatprep.subr.bf16.mxu1 %v839_v0  ;;  %621 = vmatpush3.bf16.msra.mxu0 %v678_v15 }
  0x6e   :  { %622 = vmatprep.subr.bf16.mxu0 %v839_v0 }
  0x70   :  { %607 = vmatpush3.bf16.msra.mxu1 %v673_v10 }
  0x71   :  { %608 = vmatprep.subr.bf16.mxu1 %v839_v0  ;;  %623 = vmatpush3.bf16.msra.mxu0 %v679_v16 }
  0x72   :  { %624 = vmatprep.subr.bf16.mxu0 %v839_v0 }
  0x74   :  { %609 = vmatpush3.bf16.msra.mxu1 %v674_v11 }
  0x75   :  { %610 = vmatprep.subr.bf16.mxu1 %v839_v0  ;;  %625 = vmatpush3.bf16.msra.mxu0 %v680_v17 }
  0x76   :  { %626 = vmatprep.subr.bf16.mxu0 %v839_v0 }
  0x78   :  { %611 = vmatpush3.bf16.msra.mxu1 %v675_v12 }
  0x79   :  { %636 = vmatprep.subr.bf16.mxu1 %v839_v0  ;;  %627 = vmatpush3.bf16.msra.mxu0 %v681_v18 }
  0x7a   :  { %628 = vmatprep.subr.bf16.mxu0 %v839_v0 }
  0x7d   :  { %629 = vmatpush3.bf16.msra.mxu0 %v682_v27 }
  0x7e   :  { %630 = vmatprep.subr.bf16.mxu0 %v839_v0 }
  0x81   :  { %631 = vmatpush3.bf16.msra.mxu0 %v683_v28 }
 0x136   :  { %v163_v20 = vpop.f32.mrb[0].mxu0 }
 0x137   :  { %v164_v21 = vadd.f32 %v527_v19, %v163_v20  ;;  %v594_v22 = vpop.f32.mrb[1].mxu0 }
 0x138   :  { %v166_v23 = vpop.f32.mrb[2].mxu0 }
 0x139   :  { %v169_v24 = vmax.f32 %v164_v21, 0.0  ;;  %v595_v25 = vpop.f32.mrb[3].mxu0 }
 0x13b   :  { %v170_v26 = vpack.c.bf16 %v169_v24, %v169_v24 }
 0x13d   :  { %613 = vmatmul.mubr.bf16.vlgmr.msra.gmra.mrb[0].mxu1 %v170_v26 }
 0x13e   :  { %652 = vmatprep.mubr.msk.bf16.mxu1 %vm840_vm0, %v839_v0  ;;  %637 = vmatpush3.bf16.msra.mxu1 %v684_v29 }
 0x13f   :  { %638 = vmatprep.subr.bf16.mxu1 %v839_v0 }
 0x142   :  { %639 = vmatpush3.bf16.msra.mxu1 %v685_v30 }
 0x143   :  { %640 = vmatprep.subr.bf16.mxu1 %v839_v0 }
 0x146   :  { %641 = vmatpush3.bf16.msra.mxu1 %v686_v31 }
 0x147   :  { %642 = vmatprep.subr.bf16.mxu1 %v839_v0 }
 0x14a   :  { %643 = vmatpush3.bf16.msra.mxu1 %v687_v32 }
 0x14b   :  { %644 = vmatprep.subr.bf16.mxu1 %v839_v0 }
 0x14e   :  { %645 = vmatpush3.bf16.msra.mxu1 %v688_v33 }
 0x14f   :  { %646 = vmatprep.subr.bf16.mxu1 %v839_v0 }
 0x152   :  { %647 = vmatpush3.bf16.msra.mxu1 %v689_v34 }
 0x153   :  { %648 = vmatprep.subr.bf16.mxu1 %v839_v0 }
 0x156   :  { %649 = vmatpush3.bf16.msra.mxu1 %v690_v43 }
 0x157   :  { %650 = vmatprep.subr.bf16.mxu1 %v839_v0 }
 0x15a   :  { %651 = vmatpush3.bf16.msra.mxu1 %v691_v44 }
 0x210   :  { %v276_v36 = vpop.f32.mrb[0].mxu1 }
 0x211   :  { %v277_v37 = vadd.f32 %v531_v35, %v276_v36  ;;  %v614_v38 = vpop.f32.mrb[1].mxu1 }
 0x212   :  { %v279_v39 = vpop.f32.mrb[2].mxu1 }
 0x213   :  { %v282_v40 = vmax.f32 %v277_v37, 0.0  ;;  %v615_v41 = vpop.f32.mrb[3].mxu1 }
 0x215   :  { %v283_v42 = vpack.c.bf16 %v282_v40, %v282_v40 }
 0x217   :  { %633 = vmatmul.mubr.bf16.vlgmr.msra.gmra.mrb[4].mxu0 %v283_v42 }
 0x2ea   :  { %v389_v46 = vpop.f32.mrb[4].mxu0 }
 0x2eb   :  { %v390_v47 = vadd.f32 %v540_v45, %v389_v46  ;;  %v634_v48 = vpop.f32.mrb[5].mxu0 }
 0x2ec   :  { %v392_v49 = vpop.f32.mrb[6].mxu0 }
 0x2ed   :  { %v395_v50 = vmax.f32 %v390_v47, 0.0  ;;  %v635_v51 = vpop.f32.mrb[7].mxu0 }
 0x2ef   :  { %v396_v52 = vpack.c.bf16 %v395_v50, %v395_v50 }
 0x2f1   :  { %653 = vmatmul.mubr.bf16.vlgmr.msra.gmra.mrb[4].mxu1 %v396_v52 }
 0x3c4   :  { %v502_v54 = vpop.f32.mrb[4].mxu1 }
 0x3c5   :  { %v503_v55 = vadd.f32 %v549_v53, %v502_v54  ;;  %v654_v56 = vpop.f32.mrb[5].mxu1 }
 0x3c6   :  { %v505_v57 = vpop.f32.mrb[6].mxu1 }
 0x3c7   :  { %v508_v58 = vpack.c.bf16 %v503_v55, %v503_v55  ;;  %v655_v59 = vpop.f32.mrb[7].mxu1 }
 0x3c9   :  { %509 = vst [vmem:[#allocation11] sm:$0x1] %v508_v58 }
 0x3ca   :  { %813 = shalt.err (!%p810_p2)
}
 0x3cb   :  { %s814_s10 = scalar_lea.hbm %s1031_s9, 16 }
 0x3cc   :  { %p815_p3 = scmp.ne.s32.totalorder %s1031_s9, %s814_s10  ;;  %p818_p4 = scmp.lt.u32.totalorder %s814_s10, %s1031_s9 }
 0x3ce   :  { %p820_p5 = pnand %p818_p4, %p815_p3 }
 0x3d0   :  { %823 = shalt.err (!%p820_p5)
}
 0x3d1   :  { %519 = dma.vmem_to_hbm [thread:$0]  %s517_s12, 16, %s1031_s9, [#allocation4]  }
 0x3d2   :  { %830 = dma.done.wait [#allocation4], 16  }
 0x3d3   :  { %831 = vsyncadd [#allocation4], 4294967280 }
 0x3d4   :  { %523 = vsyncpa [#allocation3], 1 }
 0x3d5   :  { %524 = vsyncpa [#allocation6], 1 }
 0x3d6   :  { %525 = vsyncpa [#allocation9], 1 }
 0x3d7   :  { %526 = vsyncpa [#allocation4], 1 }

</bundles_post_ra>
